<compile_context>
chip_gen: v7x
topology: tpu7x:2x2x1
jax: 0.10.0
libtpu: 0.0.40
codegen_flags: <defaults>
</compile_context>

<pallas_src>
import functools

import jax
import jax.numpy as jnp
from jax import lax
from jax.experimental import pallas as pl
from jax.experimental.pallas import tpu as pltpu


def _ipd_kernel(x_idx_ref, y_idx_ref, inputs_ref, o_ref, xbuf, ybuf, *, edge_tile):
    """One grid step handles `edge_tile` edges.

    x_idx_ref / y_idx_ref : SMEM (E_pad,) int32   (scalar prefetch)
    inputs_ref            : VMEM (N, D)           (resident, constant index_map)
    o_ref                 : VMEM (edge_tile, 1)   output tile
    xbuf / ybuf           : VMEM (edge_tile, D)   gather scratch
    """
    t = pl.program_id(0)
    base = t * edge_tile

    def gather_body(e, carry):
        xi = x_idx_ref[base + e]
        yi = y_idx_ref[base + e]
        xbuf[pl.ds(e, 1), :] = inputs_ref[pl.ds(xi, 1), :]
        ybuf[pl.ds(e, 1), :] = inputs_ref[pl.ds(yi, 1), :]
        return carry

    lax.fori_loop(0, edge_tile, gather_body, 0)

    x = xbuf[...].astype(jnp.float32)
    y = ybuf[...].astype(jnp.float32)
    prod = jnp.sum(x * y, axis=-1, keepdims=True)      # (edge_tile, 1)
    o_ref[...] = jax.nn.sigmoid(prod).astype(o_ref.dtype)


def inner_product_decoder(inputs, x_idx, y_idx, *, edge_tile=256):
    """Pallas TPU implementation of sigmoid(sum(inputs[x_idx]*inputs[y_idx], 1)).

    inputs: (N, D) node features; x_idx, y_idx: (E,) integer indices.
    Returns: (E,) float32.
    """
    n, d = inputs.shape
    e = x_idx.shape[0]

    te = int(edge_tile)
    num_tiles = pl.cdiv(e, te)
    e_pad = num_tiles * te

    # Pad index arrays to a tile multiple (padded edges gather row 0, results
    # are sliced away below) -- decouples tile choice from the edge count.
    xi = jnp.zeros((e_pad,), jnp.int32).at[:e].set(x_idx.astype(jnp.int32))
    yi = jnp.zeros((e_pad,), jnp.int32).at[:e].set(y_idx.astype(jnp.int32))

    kernel = functools.partial(_ipd_kernel, edge_tile=te)

    out = pl.pallas_call(
        kernel,
        out_shape=jax.ShapeDtypeStruct((e_pad, 1), jnp.float32),
        grid_spec=pltpu.PrefetchScalarGridSpec(
            num_scalar_prefetch=2,            # x_idx, y_idx -> SMEM
            grid=(num_tiles,),
            in_specs=[
                # Full feature matrix resident in VMEM across all grid steps.
                # TODO(synk): for node tables too large for VMEM, switch to
                # memory_space=pl.ANY + manual make_async_copy row gather.
                pl.BlockSpec((n, d), lambda t, xref, yref: (0, 0)),
            ],
            out_specs=pl.BlockSpec((te, 1), lambda t, xref, yref: (t, 0)),
            scratch_shapes=[
                pltpu.VMEM((te, d), inputs.dtype),
                pltpu.VMEM((te, d), inputs.dtype),
            ],
        ),
        compiler_params=pltpu.CompilerParams(
            dimension_semantics=("parallel",),
        ),
    )(xi, yi, inputs)

    return out[:e, 0]


if __name__ == "__main__":
    key = jax.random.PRNGKey(0)
    k_feat, k_x, k_y = jax.random.split(key, 3)

    num_nodes, feat_dim, num_edges = 64, 128, 500

    # Scale features so inner products don't all saturate the sigmoid.
    inputs = 0.1 * jax.random.normal(k_feat, (num_nodes, feat_dim), dtype=jnp.float32)
    x_idx = jax.random.randint(k_x, (num_edges,), 0, num_nodes, dtype=jnp.int32)
    y_idx = jax.random.randint(k_y, (num_edges,), 0, num_nodes, dtype=jnp.int32)

    out = inner_product_decoder(inputs, x_idx, y_idx, edge_tile=256)
    out = jax.block_until_ready(out)

    # Pure-JAX reference.
    ref = jax.nn.sigmoid(jnp.sum(inputs[x_idx] * inputs[y_idx], axis=1))
    assert out.shape == ref.shape, (out.shape, ref.shape)
    assert jnp.allclose(out, ref, atol=1e-5, rtol=1e-5), "mismatch vs reference"

    print("KERNEL_OK")
</pallas_src>

<mosaic_0001>
module attributes {stable_mosaic.version = 11 : i64} {
  func.func @_ipd_kernel(%arg0: i32, %arg1: memref<512xi32, #tpu.memory_space<smem>>, %arg2: memref<512xi32, #tpu.memory_space<smem>>, %arg3: memref<64x128xf32, #tpu.memory_space<vmem>>, %arg4: memref<256x1xf32, #tpu.memory_space<vmem>>, %arg5: memref<256x128xf32, #tpu.memory_space<vmem>>, %arg6: memref<256x128xf32, #tpu.memory_space<vmem>>) attributes {dimension_semantics = [#tpu.dimension_semantics<parallel>], iteration_bounds = array<i64: 2>, scalar_prefetch = 2 : i64, scratch_operands = 2 : i64, tpu.core_type = #tpu.core_type<tc>, window_params = [{pipeline_mode = #tpu.pipeline_mode<synchronous>, transform_indices = @transform_0, window_bounds = array<i64: 64, 128>}, {transform_indices = @transform_1, window_bounds = array<i64: 256, 1>}]} {
    %c256_i32 = arith.constant 256 : i32
    %0 = arith.muli %arg0, %c256_i32 : i32
    %c0_i32 = arith.constant 0 : i32
    %c256_i32_0 = arith.constant 256 : i32
    %1 = arith.addi %c0_i32, %c256_i32_0 : i32
    %c1_i32 = arith.constant 1 : i32
    scf.for %arg7 = %c0_i32 to %1 step %c1_i32  : i32 {
      %13 = arith.addi %0, %arg7 : i32
      %14 = arith.index_cast %13 : i32 to index
      %15 = memref.load %arg1[%14] : memref<512xi32, #tpu.memory_space<smem>>
      %16 = arith.addi %0, %arg7 : i32
      %17 = arith.index_cast %16 : i32 to index
      %18 = memref.load %arg2[%17] : memref<512xi32, #tpu.memory_space<smem>>
      %19 = arith.index_cast %15 : i32 to index
      %c0_8 = arith.constant 0 : index
      %20 = vector.load %arg3[%19, %c0_8] : memref<64x128xf32, #tpu.memory_space<vmem>>, vector<1x128xf32>
      %21 = arith.index_cast %arg7 : i32 to index
      %c0_9 = arith.constant 0 : index
      %22 = vector.load %arg5[%21, %c0_9] : memref<256x128xf32, #tpu.memory_space<vmem>>, vector<1x128xf32>
      tpu.vector_store %arg5[%21, %c0_9], %20 {strides = array<i32>} : memref<256x128xf32, #tpu.memory_space<vmem>>, vector<1x128xf32>,
      %23 = arith.index_cast %18 : i32 to index
      %c0_10 = arith.constant 0 : index
      %24 = vector.load %arg3[%23, %c0_10] : memref<64x128xf32, #tpu.memory_space<vmem>>, vector<1x128xf32>
      %25 = arith.index_cast %arg7 : i32 to index
      %c0_11 = arith.constant 0 : index
      %26 = vector.load %arg6[%25, %c0_11] : memref<256x128xf32, #tpu.memory_space<vmem>>, vector<1x128xf32>
      tpu.vector_store %arg6[%25, %c0_11], %24 {strides = array<i32>} : memref<256x128xf32, #tpu.memory_space<vmem>>, vector<1x128xf32>,
    }
    %c256_i32_1 = arith.constant 256 : i32
    %c0 = arith.constant 0 : index
    %c0_2 = arith.constant 0 : index
    %2 = vector.load %arg5[%c0, %c0_2] : memref<256x128xf32, #tpu.memory_space<vmem>>, vector<256x128xf32>
    %c0_3 = arith.constant 0 : index
    %c0_4 = arith.constant 0 : index
    %3 = vector.load %arg6[%c0_3, %c0_4] : memref<256x128xf32, #tpu.memory_space<vmem>>, vector<256x128xf32>
    %4 = arith.mulf %2, %3 : vector<256x128xf32>
    %cst = arith.constant dense<0.000000e+00> : vector<256xf32>
    %5 = vector.multi_reduction <add>, %4, %cst [1] : vector<256x128xf32> to vector<256xf32>
    %6 = vector.shape_cast %5 : vector<256xf32> to vector<256x1xf32>
    %7 = arith.negf %6 : vector<256x1xf32>
    %8 = math.exp %7 : vector<256x1xf32>
    %cst_5 = arith.constant 1.000000e+00 : f32
    %9 = vector.broadcast %cst_5 : f32 to vector<256x1xf32>
    %10 = arith.addf %9, %8 : vector<256x1xf32>
    %11 = arith.divf %9, %10 : vector<256x1xf32>
    %c0_6 = arith.constant 0 : index
    %c0_7 = arith.constant 0 : index
    %12 = vector.load %arg4[%c0_6, %c0_7] : memref<256x1xf32, #tpu.memory_space<vmem>>, vector<256x1xf32>
    tpu.vector_store %arg4[%c0_6, %c0_7], %11 {strides = array<i32>} : memref<256x1xf32, #tpu.memory_space<vmem>>, vector<256x1xf32>,
    return
  }
  func.func @transform_0(%arg0: i32, %arg1: memref<512xi32, #tpu.memory_space<smem>>, %arg2: memref<512xi32, #tpu.memory_space<smem>>) -> (i32, i32) {
    %c0_i32 = arith.constant 0 : i32
    %c0_i32_0 = arith.constant 0 : i32
    %c0_i32_1 = arith.constant 0 : i32
    return %c0_i32, %c0_i32_0 : i32, i32
  }
  func.func @transform_1(%arg0: i32, %arg1: memref<512xi32, #tpu.memory_space<smem>>, %arg2: memref<512xi32, #tpu.memory_space<smem>>) -> (i32, i32) {
    %c0_i32 = arith.constant 0 : i32
    %c0_i32_0 = arith.constant 0 : i32
    return %arg0, %c0_i32 : i32, i32
  }
}

</mosaic_0001>

<bundles_post_ra>
// kernel: tpu_custom_call.1
= control target key start
LH: loop header
LB: loop body
LE: loop exit
PB: predicated region body
PF: predicated region fallthrough
CT: control target
= control target key end

     0   :  { %s1029_s0 = inlined_call_operand.hbm [shape: s32[512], index: 0, kind: input, shape index: {}]   ;;  %s1030_s2 = inlined_call_operand.hbm [shape: f32[64,128], index: 2, kind: input, shape index: {}]   ;;  %s1031_s3 = inlined_call_operand.vmem [shape: f32[512,1], index: 3, kind: output, shape index: {}]   ;;  %s1032_s1 = inlined_call_operand.hbm [shape: s32[512], index: 1, kind: input, shape index: {}]  }
   0x1   :  { %s791_s14 = scalar_lea.hbm %s1029_s0, 64 }
   0x2   :  { %p792_p0 = scmp.ne.s32.totalorder %s1029_s0, %s791_s14  ;;  %p795_p1 = scmp.lt.u32.totalorder %s791_s14, %s1029_s0 }
   0x4   :  { %p797_p2 = pnand %p795_p1, %p792_p0 }
   0x6   :  { %800 = shalt.err (!%p797_p2)  }
   0x7   :  { %s861_s19 = smov [#allocation5]   ;;  %s801_s24 = scalar_lea.hbm %s1032_s1, 64 }
   0x8   :  { %9 = dma.hbm_to_smem %s1029_s0, 64, %s861_s19, [#allocation4] }
   0x9   :  { %p802_p3 = scmp.ne.s32.totalorder %s1032_s1, %s801_s24  ;;  %p805_p4 = scmp.lt.u32.totalorder %s801_s24, %s1032_s1 }
   0xb   :  { %p807_p5 = pnand %p805_p4, %p802_p3 }
   0xd   :  { %810 = shalt.err (!%p807_p5)  }
   0xe   :  { %s862_s29 = smov [#allocation6]  }
   0xf   :  { %11 = dma.hbm_to_smem %s1032_s1, 64, %s862_s29, [#allocation4] }
  0x10   :  { %847 = dma.done.wait [#allocation4], 128 }
  0x11   :  { %848 = vsyncadd [#allocation4], 4294967168 }
  0x12   :  { %13 = sfence }
  0x13   :  { %14 = vsyncpa [#allocation8], 0  ;;  %s910_s0 = smov 0  }
  0x14 LB: > { %s916_s5 = sadd.s32 4294967295, %s855_s0   ;;  %p591_p6 = scmp.ge.s32.totalorder %s855_s0, 1  ;;  %s855_s0 = sphi %s910_s0, %s20_s0  }
  0x15   : > { %p72_p7 = scmp.lt.s32.totalorder %s855_s0, 3  ;;  %s863_s1 = smov [#allocation7]  }
  0x16   : > { %s84_s6 = sshll.u32 %s863_s1, 4  ;;  %p1033_p9 = scmp.eq.s32.totalorder %s916_s5, 0  ;;  %s85_s6 = int_to_ptr.vmem [resolvable:$true] %s84_s6 }
  0x17   : > { %p920_p8 = pnand %p591_p6, %p72_p7  ;;  %s811_s11 = scalar_lea.hbm %s1030_s2, 1024 }
  0x18   : > { %p812_p12 = scmp.ne.s32.totalorder %s1030_s2, %s811_s11  ;;  %p818_p2 = scmp.lt.u32.totalorder %s811_s11, %s1030_s2 }
  0x19   : > { %s1035_s7 = scalar_select %p920_p8, 1, 0 }
  0x1a   : > { %p636_p10 = pneg %p920_p8 }
  0x1c   : > { %p929_p11 = pnand %p1033_p9, %p636_p10 }
  0x1e   : > { %p813_p13 = pneg %p929_p11 }
  0x20   : > { %p814_p0 = pnand %p813_p13, %p812_p12 }
  0x22   : > { %p815_p1 = pneg %p814_p0 }
  0x24   : > { %p820_p3 = pnand %p818_p2, %p815_p1 }
  0x26   : > { %823 = shalt.err (!%p820_p3)
}
  0x27   : > { %s824_s16 = scalar_lea.vmem %s85_s6, 1024  ;;  %p832_p7 = scmp.lt.s32.totalorder %s85_s6, %s85_s6 }
  0x28   : > { %p825_p4 = scmp.ne.s32.totalorder %s85_s6, %s824_s16  ;;  %p833_p10 = scmp.lt.s32.totalorder %s824_s16, %s824_s16 }
  0x2a   : > { %p827_p5 = pnand %p825_p4, %p813_p13  ;;  %p834_p9 = por %p833_p10, %p832_p7 }
  0x2c   : > { %p828_p6 = pneg %p827_p5 }
  0x2e   : > { %p835_p8 = pnand %p834_p9, %p828_p6 }
  0x30   : > { %838 = shalt.err (!%p835_p8)
}
  0x31   : > { %s864_s17 = smov 128   ;;  %s865_s18 = smov 8  }
  0x32   : > { %639 = dma.hbm_to_vmem [thread:$0]  (!%p929_p11), %s1030_s2, 1024, %s85_s6, [#allocation8], %s864_s17, %s864_s17, %s865_s18  }
  0x33   : > { %p1037_p12 = scmp.ne.s32.totalorder %s1035_s7, 0 }
  0x34   : > { %p1038_p0 = scmp.eq.s32.totalorder (!%p1037_p12), %s916_s5, 0 }
  0x35   : > { %100 = sbr.rel (%p1037_p12) target bundleno = 320 (0x140), region = 24 }
  0x3c   : > { %850 = dma.done.wait (%p1038_p0), [#allocation8], 1024   ;;  %p1039_p13 = pmov %p1038_p0 }
  0x3d   : > { %s595_s21 = sshll.u32 %s916_s5, 5  ;;  %s597_s22 = sshll.u32 %s916_s5, 8 }
  0x3e   : > { %852 = vsyncadd (%p1039_p13), [#allocation8], 4294966272  ;;  %p116_p8 = scmp.lt.s32.totalorder %s595_s21, 63  ;;  %s857_s27 = smov 0  }
  0x40   : > { %s1041_s21 = smov (!%p116_p8, %s595_s21), 63 }
  0x41   : > { %s596_s23 = sshll.u32 %s1041_s21, 3 }
  0x42   : > { %s960_s26 = scalar_lea.vmem %s1031_s3, %s596_s23 }
  0x43 LB: >> { %s128_s28 = sadd.s32 %s859_s27, %s597_s22  ;;  %s133_s5 = scalar_lea.vmem [#allocation2], %s859_s27  ;;  %s859_s27 = sphi %s857_s27, %s127_s27  }
  0x44   : >> { %s129_s29 = sld [smem:[#allocation5 + %s128_s28]]  ;;  %s137_s6 = scalar_lea.vmem [#allocation3], %s859_s27 }
  0x45   : >> { %s130_s30 = sld [smem:[#allocation6 + %s128_s28]]  ;;  %s127_s27 = sadd.s32 1, %s859_s27  }
  0x46   : >> { %p124_p9 = scmp.ge.s32.totalorder %s127_s27, 256  }
  0x47   : > { %vm491_vm0 = vcmask (%p124_p9), 7168  }
  0x48   : > { %126 = sbr.rel (!%p124_p9) target bundleno = 67 (0x43), region = 67 }
  0x4a   : >> { %s131_s4 = scalar_lea.vmem [#allocation7], %s129_s29 }
  0x4b   : >> { %v132_v0 = vld [vmem:[%s131_s4] sm:$0x1]  ;;  %s135_s1 = scalar_lea.vmem [#allocation7], %s130_s30 }
  0x4c   : >> { %v136_v1 = vld [vmem:[%s135_s1] sm:$0x1]  ;;  %134 = vst [vmem:[%s133_s5] sm:$0x1] %v132_v0 }
  0x4d   : >> { %138 = vst [vmem:[%s137_s6] sm:$0x1] %v136_v1 }
  0x53   : > { %v141_v2 = vld [vmem:[#allocation2 + $0x10] sm:$0xff]  ;;  %v139_v4 = vld [vmem:[#allocation2] sm:$0xff]  ;;  %v142_v7 = vld [vmem:[#allocation2 + $0x18] sm:$0xff] }
  0x54   : > { %v173_v3 = vld [vmem:[#allocation3 + $0x10] sm:$0xff]  ;;  %v171_v6 = vld [vmem:[#allocation3] sm:$0xff]  ;;  %v174_v8 = vld [vmem:[#allocation3 + $0x18] sm:$0xff] }
  0x55   : > { %v205_v5 = vmul.f32 %v173_v3, %v141_v2  ;;  %v203_v9 = vmul.f32 %v171_v6, %v139_v4  ;;  %v140_v10 = vld [vmem:[#allocation2 + $0x8] sm:$0xff]  ;;  %v206_v12 = vmul.f32 %v174_v8, %v142_v7  ;;  %v143_v16 = vld [vmem:[#allocation2 + $0x20] sm:$0xff]  ;;  %v146_v20 = vld [vmem:[#allocation2 + $0x38] sm:$0xff] }
  0x56   : > { %v172_v11 = vld [vmem:[#allocation3 + $0x8] sm:$0xff]  ;;  %v175_v17 = vld [vmem:[#allocation3 + $0x20] sm:$0xff]  ;;  %v178_v21 = vld [vmem:[#allocation3 + $0x38] sm:$0xff] }
  0x57   : > { %239 = vadd.xlane.f32.xlu1 %v205_v5  ;;  %235 = vadd.xlane.f32.xlu0 %v203_v9  ;;  %v204_v13 = vmul.f32 %v172_v11, %v140_v10  ;;  %v144_v14 = vld [vmem:[#allocation2 + $0x28] sm:$0xff]  ;;  %v207_v19 = vmul.f32 %v175_v17, %v143_v16  ;;  %v145_v22 = vld [vmem:[#allocation2 + $0x30] sm:$0xff]  ;;  %v210_v24 = vmul.f32 %v178_v21, %v146_v20  ;;  %v147_v28 = vld [vmem:[#allocation2 + $0x40] sm:$0xff] }
  0x58   : > { %v176_v15 = vld [vmem:[#allocation3 + $0x28] sm:$0xff]  ;;  %v177_v23 = vld [vmem:[#allocation3 + $0x30] sm:$0xff]  ;;  %v179_v29 = vld [vmem:[#allocation3 + $0x40] sm:$0xff] }
  0x59   : > { %v208_v18 = vmul.f32 %v176_v15, %v144_v14  ;;  %v209_v25 = vmul.f32 %v177_v23, %v145_v22  ;;  %v148_v26 = vld [vmem:[#allocation2 + $0x48] sm:$0xff]  ;;  %v211_v31 = vmul.f32 %v179_v29, %v147_v28  ;;  %v150_v32 = vld [vmem:[#allocation2 + $0x58] sm:$0xff]  ;;  %v149_v34 = vld [vmem:[#allocation2 + $0x50] sm:$0xff] }
  0x5a   : > { %v180_v27 = vld [vmem:[#allocation3 + $0x48] sm:$0xff]  ;;  %v182_v33 = vld [vmem:[#allocation3 + $0x58] sm:$0xff]  ;;  %v181_v35 = vld [vmem:[#allocation3 + $0x50] sm:$0xff] }
  0x5b   : > { %241 = vadd.xlane.f32.xlu1 %v206_v12  ;;  %237 = vadd.xlane.f32.xlu0 %v204_v13  ;;  %v212_v30 = vmul.f32 %v180_v27, %v148_v26  ;;  %v214_v36 = vmul.f32 %v182_v33, %v150_v32  ;;  %v213_v37 = vmul.f32 %v181_v35, %v149_v34  ;;  %v152_v38 = vld [vmem:[#allocation2 + $0x68] sm:$0xff]  ;;  %v151_v40 = vld [vmem:[#allocation2 + $0x60] sm:$0xff]  ;;  %v154_v44 = vld [vmem:[#allocation2 + $0x78] sm:$0xff] }
  0x5c   : > { %v184_v39 = vld [vmem:[#allocation3 + $0x68] sm:$0xff]  ;;  %v183_v41 = vld [vmem:[#allocation3 + $0x60] sm:$0xff]  ;;  %v186_v45 = vld [vmem:[#allocation3 + $0x78] sm:$0xff] }
  0x5d   : > { %v216_v42 = vmul.f32 %v184_v39, %v152_v38  ;;  %v215_v43 = vmul.f32 %v183_v41, %v151_v40  ;;  %v153_v46 = vld [vmem:[#allocation2 + $0x70] sm:$0xff]  ;;  %v218_v48 = vmul.f32 %v186_v45, %v154_v44  ;;  %v156_v50 = vld [vmem:[#allocation2 + $0x88] sm:$0xff]  ;;  %v155_v52 = vld [vmem:[#allocation2 + $0x80] sm:$0xff] }
  0x5e   : > { %v185_v47 = vld [vmem:[#allocation3 + $0x70] sm:$0xff]  ;;  %v188_v51 = vld [vmem:[#allocation3 + $0x88] sm:$0xff]  ;;  %v187_v53 = vld [vmem:[#allocation3 + $0x80] sm:$0xff] }
  0x5f   : > { %245 = vadd.xlane.f32.xlu1 %v208_v18  ;;  %243 = vadd.xlane.f32.xlu0 %v207_v19  ;;  %v217_v49 = vmul.f32 %v185_v47, %v153_v46  ;;  %v220_v54 = vmul.f32 %v188_v51, %v156_v50  ;;  %v219_v55 = vmul.f32 %v187_v53, %v155_v52  ;;  %v158_v56 = vld [vmem:[#allocation2 + $0x98] sm:$0xff]  ;;  %v157_v58 = vld [vmem:[#allocation2 + $0x90] sm:$0xff]  ;;  %v160_v62 = vld [vmem:[#allocation2 + $0xa8] sm:$0xff] }
  0x60   : > { %v190_v57 = vld [vmem:[#allocation3 + $0x98] sm:$0xff]  ;;  %v189_v59 = vld [vmem:[#allocation3 + $0x90] sm:$0xff]  ;;  %v192_v63 = vld [vmem:[#allocation3 + $0xa8] sm:$0xff] }
  0x61   : > { %v222_v60 = vmul.f32 %v190_v57, %v158_v56  ;;  %v221_v61 = vmul.f32 %v189_v59, %v157_v58  ;;  %v159_v0 = vld [vmem:[#allocation2 + $0xa0] sm:$0xff]  ;;  %v224_v2 = vmul.f32 %v192_v63, %v160_v62  ;;  %v162_v4 = vld [vmem:[#allocation2 + $0xb8] sm:$0xff]  ;;  %v161_v6 = vld [vmem:[#allocation2 + $0xb0] sm:$0xff] }
  0x62   : > { %v191_v1 = vld [vmem:[#allocation3 + $0xa0] sm:$0xff]  ;;  %v194_v5 = vld [vmem:[#allocation3 + $0xb8] sm:$0xff]  ;;  %v193_v7 = vld [vmem:[#allocation3 + $0xb0] sm:$0xff] }
  0x63   : > { %249 = vadd.xlane.f32.xlu1 %v210_v24  ;;  %247 = vadd.xlane.f32.xlu0 %v209_v25  ;;  %v223_v3 = vmul.f32 %v191_v1, %v159_v0  ;;  %v226_v8 = vmul.f32 %v194_v5, %v162_v4  ;;  %v225_v9 = vmul.f32 %v193_v7, %v161_v6  ;;  %v164_v10 = vld [vmem:[#allocation2 + $0xc8] sm:$0xff]  ;;  %v163_v12 = vld [vmem:[#allocation2 + $0xc0] sm:$0xff]  ;;  %v166_v16 = vld [vmem:[#allocation2 + $0xd8] sm:$0xff] }
  0x64   : > { %v196_v11 = vld [vmem:[#allocation3 + $0xc8] sm:$0xff]  ;;  %v195_v13 = vld [vmem:[#allocation3 + $0xc0] sm:$0xff]  ;;  %v198_v17 = vld [vmem:[#allocation3 + $0xd8] sm:$0xff] }
  0x65   : > { %v228_v14 = vmul.f32 %v196_v11, %v164_v10  ;;  %v227_v15 = vmul.f32 %v195_v13, %v163_v12  ;;  %v165_v18 = vld [vmem:[#allocation2 + $0xd0] sm:$0xff]  ;;  %v230_v20 = vmul.f32 %v198_v17, %v166_v16  ;;  %v168_v22 = vld [vmem:[#allocation2 + $0xe8] sm:$0xff]  ;;  %v167_v24 = vld [vmem:[#allocation2 + $0xe0] sm:$0xff] }
  0x66   : > { %v197_v19 = vld [vmem:[#allocation3 + $0xd0] sm:$0xff]  ;;  %v200_v23 = vld [vmem:[#allocation3 + $0xe8] sm:$0xff]  ;;  %v199_v25 = vld [vmem:[#allocation3 + $0xe0] sm:$0xff] }
  0x67   : > { %253 = vadd.xlane.f32.xlu1 %v212_v30  ;;  %251 = vadd.xlane.f32.xlu0 %v211_v31  ;;  %v229_v21 = vmul.f32 %v197_v19, %v165_v18  ;;  %v232_v26 = vmul.f32 %v200_v23, %v168_v22  ;;  %v231_v27 = vmul.f32 %v199_v25, %v167_v24  ;;  %v170_v28 = vld [vmem:[#allocation2 + $0xf8] sm:$0xff]  ;;  %v169_v30 = vld [vmem:[#allocation2 + $0xf0] sm:$0xff] }
  0x68   : > { %v202_v29 = vld [vmem:[#allocation3 + $0xf8] sm:$0xff]  ;;  %v201_v31 = vld [vmem:[#allocation3 + $0xf0] sm:$0xff] }
  0x69   : > { %v234_v32 = vmul.f32 %v202_v29, %v170_v28  ;;  %v233_v33 = vmul.f32 %v201_v31, %v169_v30 }
  0x6b   : > { %257 = vadd.xlane.f32.xlu1 %v214_v36  ;;  %255 = vadd.xlane.f32.xlu0 %v213_v37 }
  0x6f   : > { %261 = vadd.xlane.f32.xlu1 %v216_v42  ;;  %259 = vadd.xlane.f32.xlu0 %v215_v43 }
  0x73   : > { %265 = vadd.xlane.f32.xlu1 %v218_v48  ;;  %263 = vadd.xlane.f32.xlu0 %v217_v49 }
  0x77   : > { %269 = vadd.xlane.f32.xlu1 %v220_v54  ;;  %267 = vadd.xlane.f32.xlu0 %v219_v55 }
  0x7b   : > { %273 = vadd.xlane.f32.xlu1 %v222_v60  ;;  %271 = vadd.xlane.f32.xlu0 %v221_v61 }
  0x7f   : > { %277 = vadd.xlane.f32.xlu1 %v224_v2  ;;  %275 = vadd.xlane.f32.xlu0 %v223_v3 }
  0x83   : > { %281 = vadd.xlane.f32.xlu1 %v226_v8  ;;  %279 = vadd.xlane.f32.xlu0 %v225_v9 }
  0x87   : > { %285 = vadd.xlane.f32.xlu1 %v228_v14  ;;  %283 = vadd.xlane.f32.xlu0 %v227_v15 }
  0x8b   : > { %289 = vadd.xlane.f32.xlu1 %v230_v20  ;;  %287 = vadd.xlane.f32.xlu0 %v229_v21 }
  0x8f   : > { %293 = vadd.xlane.f32.xlu1 %v232_v26  ;;  %291 = vadd.xlane.f32.xlu0 %v231_v27 }
  0x93   : > { %297 = vadd.xlane.f32.xlu1 %v234_v32  ;;  %295 = vadd.xlane.f32.xlu0 %v233_v33 }
  0xe4   : > { %v240_v34 = vpop.xlane.xlu1 %239  ;;  %v236_v36 = vpop.xlane.xlu0 %235 }
  0xe5   : > { %v600_v35 = vmul.f32 -1.442695, %v240_v34  ;;  %v598_v37 = vmul.f32 -1.442695, %v236_v36 }
  0xe7   : > { %663 = vpow2.f32 %v600_v35 }
  0xe8   : > { %665 = vpow2.f32 %v598_v37  ;;  %v242_v38 = vpop.xlane.xlu1 %241  ;;  %v238_v40 = vpop.xlane.xlu0 %237 }
  0xe9   : > { %v601_v39 = vmul.f32 -1.442695, %v242_v38  ;;  %v599_v41 = vmul.f32 -1.442695, %v238_v40 }
  0xeb   : > { %667 = vpow2.f32 %v601_v39 }
  0xec   : > { %669 = vpow2.f32 %v599_v41  ;;  %v246_v42 = vpop.xlane.xlu1 %245  ;;  %v244_v44 = vpop.xlane.xlu0 %243 }
  0xed   : > { %v603_v43 = vmul.f32 -1.442695, %v246_v42  ;;  %v602_v45 = vmul.f32 -1.442695, %v244_v44 }
  0xef   : > { %671 = vpow2.f32 %v603_v43 }
  0xf0   : > { %673 = vpow2.f32 %v602_v45  ;;  %v250_v46 = vpop.xlane.xlu1 %249  ;;  %v248_v49 = vpop.xlane.xlu0 %247 }
  0xf1   : > { %v664_v47 = vpop.eup %663  ;;  %v605_v48 = vmul.f32 -1.442695, %v250_v46  ;;  %v604_v52 = vmul.f32 -1.442695, %v248_v49 }
  0xf2   : > { %v666_v50 = vpop.eup %665  ;;  %v397_v51 = vadd.f32 1.0, %v664_v47 }
  0xf3   : > { %v395_v53 = vadd.f32 1.0, %v666_v50  ;;  %675 = vpow2.f32 %v605_v48 }
  0xf4   : > { %677 = vrcp.f32 %v397_v51  ;;  %v254_v54 = vpop.xlane.xlu1 %253  ;;  %v252_v57 = vpop.xlane.xlu0 %251 }
  0xf5   : > { %v668_v55 = vpop.eup %667  ;;  %679 = vrcp.f32 %v395_v53  ;;  %v607_v56 = vmul.f32 -1.442695, %v254_v54  ;;  %v606_v60 = vmul.f32 -1.442695, %v252_v57 }
  0xf6   : > { %v670_v58 = vpop.eup %669  ;;  %v398_v59 = vadd.f32 1.0, %v668_v55  ;;  %681 = vpow2.f32 %v604_v52 }
  0xf7   : > { %v396_v61 = vadd.f32 1.0, %v670_v58  ;;  %683 = vpow2.f32 %v607_v56 }
  0xf8   : > { %685 = vrcp.f32 %v398_v59  ;;  %v258_v62 = vpop.xlane.xlu1 %257  ;;  %v256_v1 = vpop.xlane.xlu0 %255 }
  0xf9   : > { %v672_v63 = vpop.eup %671  ;;  %687 = vrcp.f32 %v396_v61  ;;  %v609_v0 = vmul.f32 -1.442695, %v258_v62  ;;  %v608_v4 = vmul.f32 -1.442695, %v256_v1 }
  0xfa   : > { %v674_v2 = vpop.eup %673  ;;  %v400_v3 = vadd.f32 1.0, %v672_v63  ;;  %689 = vpow2.f32 %v606_v60 }
  0xfb   : > { %v399_v5 = vadd.f32 1.0, %v674_v2  ;;  %691 = vpow2.f32 %v609_v0 }
  0xfc   : > { %693 = vrcp.f32 %v400_v3  ;;  %v262_v6 = vpop.xlane.xlu1 %261  ;;  %v260_v9 = vpop.xlane.xlu0 %259 }
  0xfd   : > { %v676_v7 = vpop.eup %675  ;;  %695 = vrcp.f32 %v399_v5  ;;  %v611_v8 = vmul.f32 -1.442695, %v262_v6  ;;  %v610_v12 = vmul.f32 -1.442695, %v260_v9 }
  0xfe   : > { %v678_v10 = vpop.eup %677  ;;  %v402_v11 = vadd.f32 1.0, %v676_v7  ;;  %697 = vpow2.f32 %v608_v4 }
  0xff   : > { %v680_v13 = vpop.eup %679  ;;  %494 = vst.msk [vmem:[%s960_s26 + $0x10] sm:$0xff] %vm491_vm0, %v678_v10  ;;  %699 = vpow2.f32 %v611_v8 }
 0x100   : > { %v682_v14 = vpop.eup %681  ;;  %492 = vst.msk [vmem:[%s960_s26] sm:$0xff] %vm491_vm0, %v680_v13  ;;  %701 = vrcp.f32 %v402_v11  ;;  %v266_v15 = vpop.xlane.xlu1 %265 }
 0x101   : > { %v684_v16 = vpop.eup %683  ;;  %v401_v17 = vadd.f32 1.0, %v682_v14  ;;  %703 = vpow2.f32 %v610_v12  ;;  %v613_v18 = vmul.f32 -1.442695, %v266_v15  ;;  %v264_v19 = vpop.xlane.xlu0 %263 }
 0x102   : > { %v686_v20 = vpop.eup %685  ;;  %v404_v21 = vadd.f32 1.0, %v684_v16  ;;  %v612_v22 = vmul.f32 -1.442695, %v264_v19 }
 0x103   : > { %v688_v23 = vpop.eup %687  ;;  %495 = vst.msk [vmem:[%s960_s26 + $0x18] sm:$0xff] %vm491_vm0, %v686_v20  ;;  %705 = vrcp.f32 %v401_v17 }
 0x104   : > { %v690_v24 = vpop.eup %689  ;;  %493 = vst.msk [vmem:[%s960_s26 + $0x8] sm:$0xff] %vm491_vm0, %v688_v23  ;;  %707 = vrcp.f32 %v404_v21  ;;  %v270_v25 = vpop.xlane.xlu1 %269 }
 0x105   : > { %v692_v26 = vpop.eup %691  ;;  %v403_v27 = vadd.f32 1.0, %v690_v24  ;;  %709 = vpow2.f32 %v613_v18  ;;  %v615_v28 = vmul.f32 -1.442695, %v270_v25  ;;  %v268_v29 = vpop.xlane.xlu0 %267 }
 0x106   : > { %v694_v30 = vpop.eup %693  ;;  %v406_v31 = vadd.f32 1.0, %v692_v26  ;;  %711 = vpow2.f32 %v612_v22  ;;  %v614_v32 = vmul.f32 -1.442695, %v268_v29 }
 0x107   : > { %v696_v33 = vpop.eup %695  ;;  %497 = vst.msk [vmem:[%s960_s26 + $0x28] sm:$0xff] %vm491_vm0, %v694_v30  ;;  %713 = vrcp.f32 %v403_v27 }
 0x108   : > { %v698_v34 = vpop.eup %697  ;;  %496 = vst.msk [vmem:[%s960_s26 + $0x20] sm:$0xff] %vm491_vm0, %v696_v33  ;;  %715 = vrcp.f32 %v406_v31  ;;  %v274_v35 = vpop.xlane.xlu1 %273 }
 0x109   : > { %v700_v36 = vpop.eup %699  ;;  %v405_v37 = vadd.f32 1.0, %v698_v34  ;;  %717 = vpow2.f32 %v615_v28  ;;  %v617_v38 = vmul.f32 -1.442695, %v274_v35  ;;  %v272_v39 = vpop.xlane.xlu0 %271 }
 0x10a   : > { %v702_v40 = vpop.eup %701  ;;  %v408_v41 = vadd.f32 1.0, %v700_v36  ;;  %719 = vpow2.f32 %v614_v32  ;;  %v616_v43 = vmul.f32 -1.442695, %v272_v39 }
 0x10b   : > { %v704_v42 = vpop.eup %703  ;;  %499 = vst.msk [vmem:[%s960_s26 + $0x38] sm:$0xff] %vm491_vm0, %v702_v40  ;;  %721 = vrcp.f32 %v405_v37 }
 0x10c   : > { %723 = vrcp.f32 %v408_v41  ;;  %v407_v44 = vadd.f32 1.0, %v704_v42  ;;  %v278_v45 = vpop.xlane.xlu1 %277 }
 0x10d   : > { %v706_v46 = vpop.eup %705  ;;  %725 = vpow2.f32 %v617_v38  ;;  %v619_v47 = vmul.f32 -1.442695, %v278_v45  ;;  %v276_v48 = vpop.xlane.xlu0 %275 }
 0x10e   : > { %v708_v49 = vpop.eup %707  ;;  %498 = vst.msk [vmem:[%s960_s26 + $0x30] sm:$0xff] %vm491_vm0, %v706_v46  ;;  %727 = vrcp.f32 %v407_v44  ;;  %v618_v50 = vmul.f32 -1.442695, %v276_v48 }
 0x10f   : > { %v710_v51 = vpop.eup %709  ;;  %501 = vst.msk [vmem:[%s960_s26 + $0x48] sm:$0xff] %vm491_vm0, %v708_v49  ;;  %729 = vpow2.f32 %v616_v43 }
 0x110   : > { %v712_v52 = vpop.eup %711  ;;  %v410_v53 = vadd.f32 1.0, %v710_v51  ;;  %731 = vpow2.f32 %v619_v47  ;;  %v282_v54 = vpop.xlane.xlu1 %281 }
 0x111   : > { %v714_v55 = vpop.eup %713  ;;  %v409_v56 = vadd.f32 1.0, %v712_v52  ;;  %733 = vpow2.f32 %v618_v50  ;;  %v621_v57 = vmul.f32 -1.442695, %v282_v54  ;;  %v280_v58 = vpop.xlane.xlu0 %279 }
 0x112   : > { %v716_v59 = vpop.eup %715  ;;  %500 = vst.msk [vmem:[%s960_s26 + $0x40] sm:$0xff] %vm491_vm0, %v714_v55  ;;  %735 = vrcp.f32 %v410_v53  ;;  %v620_v60 = vmul.f32 -1.442695, %v280_v58 }
 0x113   : > { %v718_v61 = vpop.eup %717  ;;  %503 = vst.msk [vmem:[%s960_s26 + $0x58] sm:$0xff] %vm491_vm0, %v716_v59  ;;  %737 = vrcp.f32 %v409_v56 }
 0x114   : > { %v720_v62 = vpop.eup %719  ;;  %v412_v63 = vadd.f32 1.0, %v718_v61  ;;  %739 = vpow2.f32 %v621_v57  ;;  %v286_v0 = vpop.xlane.xlu1 %285 }
 0x115   : > { %v722_v1 = vpop.eup %721  ;;  %v411_v2 = vadd.f32 1.0, %v720_v62  ;;  %741 = vpow2.f32 %v620_v60  ;;  %v623_v3 = vmul.f32 -1.442695, %v286_v0  ;;  %v284_v4 = vpop.xlane.xlu0 %283 }
 0x116   : > { %v724_v5 = vpop.eup %723  ;;  %502 = vst.msk [vmem:[%s960_s26 + $0x50] sm:$0xff] %vm491_vm0, %v722_v1  ;;  %743 = vrcp.f32 %v412_v63  ;;  %v622_v6 = vmul.f32 -1.442695, %v284_v4 }
 0x117   : > { %v726_v7 = vpop.eup %725  ;;  %505 = vst.msk [vmem:[%s960_s26 + $0x68] sm:$0xff] %vm491_vm0, %v724_v5  ;;  %745 = vrcp.f32 %v411_v2 }
 0x118   : > { %v728_v8 = vpop.eup %727  ;;  %v414_v9 = vadd.f32 1.0, %v726_v7  ;;  %747 = vpow2.f32 %v623_v3  ;;  %v290_v10 = vpop.xlane.xlu1 %289 }
 0x119   : > { %v730_v11 = vpop.eup %729  ;;  %504 = vst.msk [vmem:[%s960_s26 + $0x60] sm:$0xff] %vm491_vm0, %v728_v8  ;;  %749 = vpow2.f32 %v622_v6  ;;  %v625_v12 = vmul.f32 -1.442695, %v290_v10  ;;  %v288_v13 = vpop.xlane.xlu0 %287 }
 0x11a   : > { %v732_v14 = vpop.eup %731  ;;  %751 = vrcp.f32 %v414_v9  ;;  %v413_v15 = vadd.f32 1.0, %v730_v11  ;;  %v624_v18 = vmul.f32 -1.442695, %v288_v13 }
 0x11b   : > { %v734_v16 = vpop.eup %733  ;;  %v416_v17 = vadd.f32 1.0, %v732_v14  ;;  %753 = vpow2.f32 %v625_v12 }
 0x11c   : > { %v736_v19 = vpop.eup %735  ;;  %755 = vrcp.f32 %v413_v15  ;;  %v415_v20 = vadd.f32 1.0, %v734_v16  ;;  %v294_v21 = vpop.xlane.xlu1 %293 }
 0x11d   : > { %v738_v22 = vpop.eup %737  ;;  %507 = vst.msk [vmem:[%s960_s26 + $0x78] sm:$0xff] %vm491_vm0, %v736_v19  ;;  %757 = vrcp.f32 %v416_v17  ;;  %v627_v23 = vmul.f32 -1.442695, %v294_v21  ;;  %v292_v24 = vpop.xlane.xlu0 %291 }
 0x11e   : > { %v740_v25 = vpop.eup %739  ;;  %506 = vst.msk [vmem:[%s960_s26 + $0x70] sm:$0xff] %vm491_vm0, %v738_v22  ;;  %759 = vrcp.f32 %v415_v20  ;;  %v626_v28 = vmul.f32 -1.442695, %v292_v24 }
 0x11f   : > { %v742_v26 = vpop.eup %741  ;;  %v418_v27 = vadd.f32 1.0, %v740_v25  ;;  %761 = vpow2.f32 %v624_v18 }
 0x120   : > { %v744_v29 = vpop.eup %743  ;;  %v417_v30 = vadd.f32 1.0, %v742_v26  ;;  %763 = vpow2.f32 %v627_v23  ;;  %v298_v31 = vpop.xlane.xlu1 %297 }
 0x121   : > { %v746_v32 = vpop.eup %745  ;;  %509 = vst.msk [vmem:[%s960_s26 + $0x88] sm:$0xff] %vm491_vm0, %v744_v29  ;;  %765 = vrcp.f32 %v418_v27  ;;  %v629_v33 = vmul.f32 -1.442695, %v298_v31  ;;  %v296_v34 = vpop.xlane.xlu0 %295 }
 0x122   : > { %v748_v35 = vpop.eup %747  ;;  %508 = vst.msk [vmem:[%s960_s26 + $0x80] sm:$0xff] %vm491_vm0, %v746_v32  ;;  %767 = vrcp.f32 %v417_v30  ;;  %v628_v38 = vmul.f32 -1.442695, %v296_v34 }
 0x123   : > { %v750_v36 = vpop.eup %749  ;;  %v420_v37 = vadd.f32 1.0, %v748_v35  ;;  %769 = vpow2.f32 %v626_v28 }
 0x124   : > { %v752_v39 = vpop.eup %751  ;;  %v419_v40 = vadd.f32 1.0, %v750_v36  ;;  %771 = vpow2.f32 %v629_v33 }
 0x125   : > { %v754_v41 = vpop.eup %753  ;;  %511 = vst.msk [vmem:[%s960_s26 + $0x98] sm:$0xff] %vm491_vm0, %v752_v39  ;;  %773 = vrcp.f32 %v420_v37 }
 0x126   : > { %v756_v42 = vpop.eup %755  ;;  %775 = vrcp.f32 %v419_v40  ;;  %v422_v43 = vadd.f32 1.0, %v754_v41 }
 0x127   : > { %v758_v44 = vpop.eup %757  ;;  %510 = vst.msk [vmem:[%s960_s26 + $0x90] sm:$0xff] %vm491_vm0, %v756_v42  ;;  %777 = vpow2.f32 %v628_v38 }
 0x128   : > { %v760_v45 = vpop.eup %759  ;;  %513 = vst.msk [vmem:[%s960_s26 + $0xa8] sm:$0xff] %vm491_vm0, %v758_v44  ;;  %779 = vrcp.f32 %v422_v43 }
 0x129   : > { %v762_v46 = vpop.eup %761  ;;  %512 = vst.msk [vmem:[%s960_s26 + $0xa0] sm:$0xff] %vm491_vm0, %v760_v45 }
 0x12a   : > { %v764_v47 = vpop.eup %763  ;;  %v421_v48 = vadd.f32 1.0, %v762_v46 }
 0x12b   : > { %v766_v49 = vpop.eup %765  ;;  %v424_v50 = vadd.f32 1.0, %v764_v47 }
 0x12c   : > { %v768_v51 = vpop.eup %767  ;;  %515 = vst.msk [vmem:[%s960_s26 + $0xb8] sm:$0xff] %vm491_vm0, %v766_v49  ;;  %781 = vrcp.f32 %v421_v48 }
 0x12d   : > { %v770_v52 = vpop.eup %769  ;;  %514 = vst.msk [vmem:[%s960_s26 + $0xb0] sm:$0xff] %vm491_vm0, %v768_v51  ;;  %783 = vrcp.f32 %v424_v50 }
 0x12e   : > { %v772_v53 = vpop.eup %771  ;;  %v423_v54 = vadd.f32 1.0, %v770_v52 }
 0x12f   : > { %v774_v55 = vpop.eup %773  ;;  %v426_v56 = vadd.f32 1.0, %v772_v53 }
 0x130   : > { %v776_v57 = vpop.eup %775  ;;  %517 = vst.msk [vmem:[%s960_s26 + $0xc8] sm:$0xff] %vm491_vm0, %v774_v55  ;;  %785 = vrcp.f32 %v423_v54 }
 0x131   : > { %v778_v58 = vpop.eup %777  ;;  %516 = vst.msk [vmem:[%s960_s26 + $0xc0] sm:$0xff] %vm491_vm0, %v776_v57  ;;  %787 = vrcp.f32 %v426_v56 }
 0x132   : > { %v780_v59 = vpop.eup %779  ;;  %v425_v60 = vadd.f32 1.0, %v778_v58 }
 0x133   : > { %519 = vst.msk [vmem:[%s960_s26 + $0xd8] sm:$0xff] %vm491_vm0, %v780_v59 }
 0x134   : > { %789 = vrcp.f32 %v425_v60 }
 0x136   : > { %v782_v61 = vpop.eup %781 }
 0x137   : > { %v784_v62 = vpop.eup %783  ;;  %518 = vst.msk [vmem:[%s960_s26 + $0xd0] sm:$0xff] %vm491_vm0, %v782_v61 }
 0x138   : > { %521 = vst.msk [vmem:[%s960_s26 + $0xe8] sm:$0xff] %vm491_vm0, %v784_v62 }
 0x13a   : > { %v786_v63 = vpop.eup %785 }
 0x13b   : > { %v788_v0 = vpop.eup %787  ;;  %520 = vst.msk [vmem:[%s960_s26 + $0xe0] sm:$0xff] %vm491_vm0, %v786_v63 }
 0x13c   : > { %523 = vst.msk [vmem:[%s960_s26 + $0xf8] sm:$0xff] %vm491_vm0, %v788_v0 }
 0x13e   : > { %v790_v1 = vpop.eup %789 }
 0x13f   : > { %522 = vst.msk [vmem:[%s960_s26 + $0xf0] sm:$0xff] %vm491_vm0, %v790_v1 }
 0x140 PF: > { %s20_s0 = sadd.s32 1, %s855_s0  }
 0x141   : > { %p17_p11 = scmp.ge.s32.totalorder %s20_s0, 4  }
 0x143   :  { %19 = sbr.rel (!%p17_p11) target bundleno = 20 (0x14), region = 78 }
 0x14a   :  { %546 = vsyncpa [#allocation8], 1 }
 0x14b   :  { %548 = vsyncpa [#allocation8 + $0x1], 1 }

</bundles_post_ra>
